<compile_context>
chip_gen: v7x
topology: tpu7x:2x2x1
jax: 0.10.0
libtpu: 0.0.40
codegen_flags: <defaults>
</compile_context>

<pallas_src>
import functools

import jax
import jax.numpy as jnp
from jax import lax
from jax.experimental import pallas as pl
from jax.experimental.pallas import tpu as pltpu

EPS = 1e-5      # nn.BatchNorm2d default eps
LANE = 128      # TPU lane width


def _ru(x, m):
    return (x + m - 1) // m * m


# ------------------------------- Pallas kernels ------------------------------- #
def _mm_stats_kernel(*refs, two):
    """Pass A: MXU matmul(s) + per-tile per-channel sum / sum-of-squares."""
    if two:
        xa, wa, xb, wb, ya_o, yb_o, st_o = refs
    else:
        xa, wa, ya_o, st_o = refs
        xb = wb = yb_o = None

    ya = jnp.dot(xa[...], wa[...], preferred_element_type=jnp.float32)
    ya_o[...] = ya
    rows = [jnp.sum(ya, axis=0, keepdims=True),
            jnp.sum(ya * ya, axis=0, keepdims=True)]
    if two:
        yb = jnp.dot(xb[...], wb[...], preferred_element_type=jnp.float32)
        yb_o[...] = yb
        rows += [jnp.sum(yb, axis=0, keepdims=True),
                 jnp.sum(yb * yb, axis=0, keepdims=True)]
    zpad = 8 - len(rows)
    rows.append(jnp.zeros((zpad, ya.shape[1]), jnp.float32))
    st_o[...] = jnp.concatenate(rows, axis=0)          # (8, Cp) stats block per tile


def _norm_kernel(*refs, two, has_res, relu):
    """Pass B: BN as per-channel FMA (+ fused shortcut branch / residual) (+ ReLU)."""
    it = iter(refs)
    ya = next(it)
    yb = next(it) if two else None
    rs = next(it) if has_res else None
    aff = next(it)
    o = next(it)

    a = aff[...]                                       # rows: scale_a, shift_a, scale_b, shift_b
    out = ya[...] * a[0:1, :] + a[1:2, :]
    if two:
        out = out + (yb[...] * a[2:3, :] + a[3:4, :])
    if has_res:
        out = out + rs[...].astype(jnp.float32)
    if relu:
        out = jnp.maximum(out, 0.0)
    o[...] = out.astype(o.dtype)


# --------------------------------- wrapper ------------------------------------ #
def fused_conv_bn(branches, *, relu, residual=None, out_dtype=jnp.float32,
                  mxu_dtype=jnp.bfloat16, tm=512):
    """branches: list of (patches (M, K), w2d (K, C), gamma (C,), beta (C,)).

    Computes BatchNorm2d(batch stats, eps=1e-5)(patches @ w2d) per branch, sums the
    branches (+ optional raw `residual`), applies optional ReLU.  Returns (M, C).
    Conv bias is intentionally omitted (exactly cancelled by BN mean subtraction).
    """
    assert len(branches) in (1, 2)
    M = branches[0][0].shape[0]
    C = branches[0][1].shape[1]
    cp = _ru(C, LANE)                       # lane-dense output channels
    tm = min(tm, _ru(M, 16))                # keep double-buffered tiles well inside VMEM
    mp = _ru(M, tm)
    ntiles = mp // tm
    nb = len(branches)

    # ---------------- pass A: tiled matmul + partial statistics ---------------- #
    inputs, in_specs = [], []
    for patches, w, _, _ in branches:
        K = patches.shape[1]
        kp = _ru(K, LANE)
        xp = jnp.pad(patches.astype(mxu_dtype), ((0, mp - M), (0, kp - K)))
        wp = jnp.pad(w.astype(mxu_dtype), ((0, kp - K), (0, cp - C)))
        inputs += [xp, wp]
        in_specs += [pl.BlockSpec((tm, kp), lambda i: (i, 0)),
                     pl.BlockSpec((kp, cp), lambda i: (0, 0))]

    out_shapes = [jax.ShapeDtypeStruct((mp, cp), jnp.float32) for _ in range(nb)]
    out_shapes.append(jax.ShapeDtypeStruct((8 * ntiles, cp), jnp.float32))
    out_specs = [pl.BlockSpec((tm, cp), lambda i: (i, 0)) for _ in range(nb)]
    out_specs.append(pl.BlockSpec((8, cp), lambda i: (i, 0)))

    outs = pl.pallas_call(
        functools.partial(_mm_stats_kernel, two=(nb == 2)),
        out_shape=tuple(out_shapes),
        grid=(ntiles,),
        in_specs=in_specs,
        out_specs=tuple(out_specs),
        compiler_params=pltpu.CompilerParams(dimension_semantics=("parallel",)),
    )(*inputs)
    ys = list(outs[:nb])
    stats = jnp.sum(outs[nb].reshape(ntiles, 8, cp), axis=0)     # (8, cp) global sums

    # ---- fold BN into one per-channel scale/shift (divide by the TRUE M, not mp) ----
    aff_rows = []
    for bi, (_, _, gamma, beta) in enumerate(branches):
        mean = stats[2 * bi] / M
        var = stats[2 * bi + 1] / M - mean * mean                # biased batch variance
        g = jnp.pad(gamma.astype(jnp.float32), (0, cp - C))
        b = jnp.pad(beta.astype(jnp.float32), (0, cp - C))
        scale = g * lax.rsqrt(var + EPS)
        aff_rows += [scale, b - mean * scale]
    aff_rows.append(jnp.zeros((8 - len(aff_rows), cp), jnp.float32))
    aff = jnp.concatenate([r.reshape(-1, cp) for r in aff_rows], axis=0)   # (8, cp)

    # ---------------- pass B: normalize + combine + ReLU (tiled) ---------------- #
    inputs_b = list(ys)
    in_specs_b = [pl.BlockSpec((tm, cp), lambda i: (i, 0)) for _ in ys]
    if residual is not None:
        rp = jnp.pad(residual.astype(jnp.float32), ((0, mp - M), (0, cp - C)))
        inputs_b.append(rp)
        in_specs_b.append(pl.BlockSpec((tm, cp), lambda i: (i, 0)))
    inputs_b.append(aff)
    in_specs_b.append(pl.BlockSpec((8, cp), lambda i: (0, 0)))

    out = pl.pallas_call(
        functools.partial(_norm_kernel, two=(nb == 2),
                          has_res=residual is not None, relu=relu),
        out_shape=jax.ShapeDtypeStruct((mp, cp), out_dtype),
        grid=(ntiles,),
        in_specs=in_specs_b,
        out_specs=pl.BlockSpec((tm, cp), lambda i: (i, 0)),
        compiler_params=pltpu.CompilerParams(dimension_semantics=("parallel",)),
    )(*inputs_b)
    return out[:M, :C]


# --------------------------------- JAX glue ----------------------------------- #
def _patches(x_nhwc, kh, kw, stride, pad):
    """(N,H,W,C) -> ((N*Ho*Wo, C*kh*kw) patch rows, (N,Ho,Wo)) via a fused XLA gather.

    Feature order is (c, kh, kw) with c slowest, matching a flattened PyTorch OIHW weight.
    """
    p = lax.conv_general_dilated_patches(
        x_nhwc, (kh, kw), (stride, stride), [(pad, pad), (pad, pad)],
        dimension_numbers=("NHWC", "HWIO", "NHWC"))
    N, Ho, Wo, K = p.shape
    return p.reshape(N * Ho * Wo, K), (N, Ho, Wo)


def _w2d(w_oihw):
    """PyTorch OIHW conv weight -> (Cin*kh*kw, Cout), matching _patches ordering."""
    return w_oihw.reshape(w_oihw.shape[0], -1).T


def residual_block_2d(x_nchw, p, *, stride, mxu_dtype=jnp.bfloat16, tm=512):
    """Forward pass of ResidualBlock2D.  Input/output are NCHW."""
    x = jnp.transpose(x_nchw, (0, 2, 3, 1)).astype(mxu_dtype)    # NHWC, MXU operand dtype
    N, H, W, Cin = x.shape
    Cout = p["w1"].shape[0]

    # conv1 (7x7 / s2 / p3) + bn1 + relu  -> emitted bf16 so conv2's im2col reads half the bytes
    p1, (_, h1, w1) = _patches(x, 7, 7, 2, 3)
    y1 = fused_conv_bn([(p1, _w2d(p["w1"]), p["g1"], p["beta1"])],
                       relu=True, out_dtype=mxu_dtype, mxu_dtype=mxu_dtype, tm=tm)
    y1 = y1.reshape(N, h1, w1, Cout)

    # conv2 (3x3 / s / p1) + bn2, shortcut (1x1 / s + BN) fused as a second matmul branch, + relu
    p2, (_, h2, w2) = _patches(y1, 3, 3, stride, 1)
    if stride != 1 or Cin != Cout:
        psc, (_, hs, ws) = _patches(x, 1, 1, stride, 0)
        # The PyTorch module only type-checks when both paths reach the same spatial size.
        assert (hs, ws) == (h2, w2), "residual add shape mismatch (inherited from the module)"
        out = fused_conv_bn(
            [(p2, _w2d(p["w2"]), p["g2"], p["beta2"]),
             (psc, _w2d(p["w_sc"]), p["g_sc"], p["beta_sc"])],
            relu=True, out_dtype=jnp.float32, mxu_dtype=mxu_dtype, tm=tm)
    else:
        assert (H, W) == (h2, w2), "residual add shape mismatch (inherited from the module)"
        res = x.reshape(N * H * W, Cin)
        out = fused_conv_bn([(p2, _w2d(p["w2"]), p["g2"], p["beta2"])],
                            relu=True, residual=res, out_dtype=jnp.float32,
                            mxu_dtype=mxu_dtype, tm=tm)

    out = out.reshape(N, h2, w2, Cout)
    return jnp.transpose(out, (0, 3, 1, 2))              # -> NCHW


# ----------------------------- pure-JAX reference ------------------------------ #
def _conv_ref(x, w, b, stride, pad, dt):
    y = lax.conv_general_dilated(
        x.astype(dt), w.astype(dt), (stride, stride), [(pad, pad), (pad, pad)],
        dimension_numbers=("NCHW", "OIHW", "NCHW"),
        preferred_element_type=jnp.float32)
    return y + b[None, :, None, None]


def _bn_ref(x, g, beta):
    mean = jnp.mean(x, axis=(0, 2, 3), keepdims=True)
    var = jnp.mean(jnp.square(x - mean), axis=(0, 2, 3), keepdims=True)
    return (x - mean) * lax.rsqrt(var + EPS) * g[None, :, None, None] + beta[None, :, None, None]


def residual_block_2d_ref(x, p, stride, dt=jnp.float32):
    Cin, Cout = x.shape[1], p["w1"].shape[0]
    if stride != 1 or Cin != Cout:
        identity = _bn_ref(_conv_ref(x, p["w_sc"], p["b_sc"], stride, 0, dt),
                           p["g_sc"], p["beta_sc"])
    else:
        identity = x
    out = jax.nn.relu(_bn_ref(_conv_ref(x, p["w1"], p["b1"], 2, 3, dt), p["g1"], p["beta1"]))
    out = _bn_ref(_conv_ref(out, p["w2"], p["b2"], stride, 1, dt), p["g2"], p["beta2"])
    out = out + identity
    return jax.nn.relu(out)


# ------------------------------------ main ------------------------------------- #
if __name__ == "__main__":
    # NOTE: the PyTorch module adds a shortcut downsampled by `stride` to a main path downsampled
    # by 2*stride (conv1 is always stride 2), so its forward only type-checks when both paths
    # collapse to the same spatial size (stride >= H).  Demo: H = W = 16, stride = 16.
    N, Cin, Cout, H, W, stride = 8, 4, 8, 16, 16, 16

    key = jax.random.PRNGKey(0)
    ks = jax.random.split(key, 13)
    params = dict(
        w1=0.1 * jax.random.normal(ks[0], (Cout, Cin, 7, 7), jnp.float32),
        b1=0.1 * jax.random.normal(ks[1], (Cout,), jnp.float32),
        g1=1.0 + 0.1 * jax.random.normal(ks[2], (Cout,), jnp.float32),
        beta1=0.1 * jax.random.normal(ks[3], (Cout,), jnp.float32),
        w2=0.1 * jax.random.normal(ks[4], (Cout, Cout, 3, 3), jnp.float32),
        b2=0.1 * jax.random.normal(ks[5], (Cout,), jnp.float32),
        g2=1.0 + 0.1 * jax.random.normal(ks[6], (Cout,), jnp.float32),
        beta2=0.1 * jax.random.normal(ks[7], (Cout,), jnp.float32),
        w_sc=0.1 * jax.random.normal(ks[8], (Cout, Cin, 1, 1), jnp.float32),
        b_sc=0.1 * jax.random.normal(ks[9], (Cout,), jnp.float32),
        g_sc=1.0 + 0.1 * jax.random.normal(ks[10], (Cout,), jnp.float32),
        beta_sc=0.1 * jax.random.normal(ks[11], (Cout,), jnp.float32),
    )
    x = jax.random.normal(ks[12], (N, Cin, H, W), jnp.float32)

    # tm=128 so conv1 (M = N*8*8 = 512 rows) exercises a multi-tile grid + cross-tile BN stats.
    fwd = jax.jit(functools.partial(residual_block_2d, stride=stride, tm=128))
    out = jax.block_until_ready(fwd(x, params))

    # Precision-matched reference: same bf16 MXU operands / f32 accumulation policy.
    ref = residual_block_2d_ref(x, params, stride, dt=jnp.bfloat16)
    assert out.shape == ref.shape == (N, Cout, 1, 1)
    err = float(jnp.max(jnp.abs(out - ref)))
    # BN over only M = N samples (the module's spatial collapse) amplifies bf16 rounding by
    # rsqrt(var+eps); 5e-2 is still far below any real-bug error scale (outputs are O(1)).
    if err < 5e-2:
        print("KERNEL_OK")
    else:
        print(f"MISMATCH max_abs_err={err}")
</pallas_src>

<mosaic_0001>
module attributes {stable_mosaic.version = 11 : i64} {
  func.func @_mm_stats_kernel(%arg0: i32, %arg1: memref<128x256xbf16, #tpu.memory_space<vmem>>, %arg2: memref<256x128xbf16, #tpu.memory_space<vmem>>, %arg3: memref<128x128xf32, #tpu.memory_space<vmem>>, %arg4: memref<8x128xf32, #tpu.memory_space<vmem>>) attributes {dimension_semantics = [#tpu.dimension_semantics<parallel>], iteration_bounds = array<i64: 4>, scalar_prefetch = 0 : i64, scratch_operands = 0 : i64, tpu.core_type = #tpu.core_type<tc>, window_params = [{transform_indices = @transform_0, window_bounds = array<i64: 128, 256>}, {pipeline_mode = #tpu.pipeline_mode<synchronous>, transform_indices = @transform_1, window_bounds = array<i64: 256, 128>}, {transform_indices = @transform_2, window_bounds = array<i64: 128, 128>}, {transform_indices = @transform_3, window_bounds = array<i64: 8, 128>}]} {
    %c0 = arith.constant 0 : index
    %c0_0 = arith.constant 0 : index
    %0 = vector.load %arg1[%c0, %c0_0] : memref<128x256xbf16, #tpu.memory_space<vmem>>, vector<128x256xbf16>
    %c0_1 = arith.constant 0 : index
    %c0_2 = arith.constant 0 : index
    %1 = vector.load %arg2[%c0_1, %c0_2] : memref<256x128xbf16, #tpu.memory_space<vmem>>, vector<256x128xbf16>
    %cst = arith.constant dense<0.000000e+00> : vector<128x128xf32>
    %2 = tpu.matmul %0, %1, %cst {dimension_numbers = #tpu.dot_dimension_numbers<[1], [0], [0], [1], [0, 0, 1, 1], [], []>} : vector<128x256xbf16>, vector<256x128xbf16>, vector<128x128xf32> -> vector<128x128xf32>
    %c0_3 = arith.constant 0 : index
    %c0_4 = arith.constant 0 : index
    %3 = vector.load %arg3[%c0_3, %c0_4] : memref<128x128xf32, #tpu.memory_space<vmem>>, vector<128x128xf32>
    tpu.vector_store %arg3[%c0_3, %c0_4], %2 {strides = array<i32>} : memref<128x128xf32, #tpu.memory_space<vmem>>, vector<128x128xf32>,
    %cst_5 = arith.constant dense<0.000000e+00> : vector<128xf32>
    %4 = vector.multi_reduction <add>, %2, %cst_5 [0] : vector<128x128xf32> to vector<128xf32>
    %5 = vector.shape_cast %4 : vector<128xf32> to vector<1x128xf32>
    %6 = arith.mulf %2, %2 : vector<128x128xf32>
    %cst_6 = arith.constant dense<0.000000e+00> : vector<128xf32>
    %7 = vector.multi_reduction <add>, %6, %cst_6 [0] : vector<128x128xf32> to vector<128xf32>
    %8 = vector.shape_cast %7 : vector<128xf32> to vector<1x128xf32>
    %cst_7 = arith.constant 0.000000e+00 : f32
    %9 = vector.broadcast %cst_7 : f32 to vector<6x128xf32>
    %10 = tpu.concatenate %5, %8, %9 in 0 : vector<1x128xf32>, vector<1x128xf32>, vector<6x128xf32> -> vector<8x128xf32>
    %c0_8 = arith.constant 0 : index
    %c0_9 = arith.constant 0 : index
    %11 = vector.load %arg4[%c0_8, %c0_9] : memref<8x128xf32, #tpu.memory_space<vmem>>, vector<8x128xf32>
    tpu.vector_store %arg4[%c0_8, %c0_9], %10 {strides = array<i32>} : memref<8x128xf32, #tpu.memory_space<vmem>>, vector<8x128xf32>,
    return
  }
  func.func @transform_0(%arg0: i32) -> (i32, i32) {
    %c0_i32 = arith.constant 0 : i32
    %c0_i32_0 = arith.constant 0 : i32
    return %arg0, %c0_i32 : i32, i32
  }
  func.func @transform_1(%arg0: i32) -> (i32, i32) {
    %c0_i32 = arith.constant 0 : i32
    %c0_i32_0 = arith.constant 0 : i32
    %c0_i32_1 = arith.constant 0 : i32
    return %c0_i32, %c0_i32_0 : i32, i32
  }
  func.func @transform_2(%arg0: i32) -> (i32, i32) {
    %c0_i32 = arith.constant 0 : i32
    %c0_i32_0 = arith.constant 0 : i32
    return %arg0, %c0_i32 : i32, i32
  }
  func.func @transform_3(%arg0: i32) -> (i32, i32) {
    %c0_i32 = arith.constant 0 : i32
    %c0_i32_0 = arith.constant 0 : i32
    return %arg0, %c0_i32 : i32, i32
  }
}

module attributes {stable_mosaic.version = 11 : i64} {
  func.func @_norm_kernel(%arg0: i32, %arg1: memref<128x128xf32, #tpu.memory_space<vmem>>, %arg2: memref<8x128xf32, #tpu.memory_space<vmem>>, %arg3: memref<128x128xbf16, #tpu.memory_space<vmem>>) attributes {dimension_semantics = [#tpu.dimension_semantics<parallel>], iteration_bounds = array<i64: 4>, scalar_prefetch = 0 : i64, scratch_operands = 0 : i64, tpu.core_type = #tpu.core_type<tc>, window_params = [{transform_indices = @transform_0, window_bounds = array<i64: 128, 128>}, {pipeline_mode = #tpu.pipeline_mode<synchronous>, transform_indices = @transform_1, window_bounds = array<i64: 8, 128>}, {transform_indices = @transform_2, window_bounds = array<i64: 128, 128>}]} {
    %c0 = arith.constant 0 : index
    %c0_0 = arith.constant 0 : index
    %0 = vector.load %arg2[%c0, %c0_0] : memref<8x128xf32, #tpu.memory_space<vmem>>, vector<8x128xf32>
    %c0_1 = arith.constant 0 : index
    %c0_2 = arith.constant 0 : index
    %1 = vector.load %arg1[%c0_1, %c0_2] : memref<128x128xf32, #tpu.memory_space<vmem>>, vector<128x128xf32>
    %2 = vector.extract_strided_slice %0 {offsets = [0, 0], sizes = [1, 128], strides = [1, 1]} : vector<8x128xf32> to vector<1x128xf32>
    %3 = vector.broadcast %2 : vector<1x128xf32> to vector<128x128xf32>
    %4 = arith.mulf %1, %3 : vector<128x128xf32>
    %5 = vector.extract_strided_slice %0 {offsets = [1, 0], sizes = [1, 128], strides = [1, 1]} : vector<8x128xf32> to vector<1x128xf32>
    %6 = vector.broadcast %5 : vector<1x128xf32> to vector<128x128xf32>
    %7 = arith.addf %4, %6 : vector<128x128xf32>
    %cst = arith.constant 0.000000e+00 : f32
    %8 = vector.broadcast %cst : f32 to vector<128x128xf32>
    %9 = arith.maximumf %7, %8 : vector<128x128xf32>
    %10 = arith.truncf %9 : vector<128x128xf32> to vector<128x128xbf16>
    %c0_3 = arith.constant 0 : index
    %c0_4 = arith.constant 0 : index
    %11 = vector.load %arg3[%c0_3, %c0_4] : memref<128x128xbf16, #tpu.memory_space<vmem>>, vector<128x128xbf16>
    tpu.vector_store %arg3[%c0_3, %c0_4], %10 {strides = array<i32>} : memref<128x128xbf16, #tpu.memory_space<vmem>>, vector<128x128xbf16>,
    return
  }
  func.func @transform_0(%arg0: i32) -> (i32, i32) {
    %c0_i32 = arith.constant 0 : i32
    %c0_i32_0 = arith.constant 0 : i32
    return %arg0, %c0_i32 : i32, i32
  }
  func.func @transform_1(%arg0: i32) -> (i32, i32) {
    %c0_i32 = arith.constant 0 : i32
    %c0_i32_0 = arith.constant 0 : i32
    %c0_i32_1 = arith.constant 0 : i32
    return %c0_i32, %c0_i32_0 : i32, i32
  }
  func.func @transform_2(%arg0: i32) -> (i32, i32) {
    %c0_i32 = arith.constant 0 : i32
    %c0_i32_0 = arith.constant 0 : i32
    return %arg0, %c0_i32 : i32, i32
  }
}

module attributes {stable_mosaic.version = 11 : i64} {
  func.func @_mm_stats_kernel(%arg0: i32, %arg1: memref<16x128xbf16, #tpu.memory_space<vmem>>, %arg2: memref<128x128xbf16, #tpu.memory_space<vmem>>, %arg3: memref<16x128xbf16, #tpu.memory_space<vmem>>, %arg4: memref<128x128xbf16, #tpu.memory_space<vmem>>, %arg5: memref<16x128xf32, #tpu.memory_space<vmem>>, %arg6: memref<16x128xf32, #tpu.memory_space<vmem>>, %arg7: memref<8x128xf32, #tpu.memory_space<vmem>>) attributes {dimension_semantics = [#tpu.dimension_semantics<parallel>], iteration_bounds = array<i64: 1>, scalar_prefetch = 0 : i64, scratch_operands = 0 : i64, tpu.core_type = #tpu.core_type<tc>, window_params = [{transform_indices = @transform_0, window_bounds = array<i64: 16, 128>}, {pipeline_mode = #tpu.pipeline_mode<synchronous>, transform_indices = @transform_1, window_bounds = array<i64: 128, 128>}, {transform_indices = @transform_2, window_bounds = array<i64: 16, 128>}, {pipeline_mode = #tpu.pipeline_mode<synchronous>, transform_indices = @transform_3, window_bounds = array<i64: 128, 128>}, {transform_indices = @transform_4, window_bounds = array<i64: 16, 128>}, {transform_indices = @transform_5, window_bounds = array<i64: 16, 128>}, {transform_indices = @transform_6, window_bounds = array<i64: 8, 128>}]} {
    %c0 = arith.constant 0 : index
    %c0_0 = arith.constant 0 : index
    %0 = vector.load %arg1[%c0, %c0_0] : memref<16x128xbf16, #tpu.memory_space<vmem>>, vector<16x128xbf16>
    %c0_1 = arith.constant 0 : index
    %c0_2 = arith.constant 0 : index
    %1 = vector.load %arg2[%c0_1, %c0_2] : memref<128x128xbf16, #tpu.memory_space<vmem>>, vector<128x128xbf16>
    %cst = arith.constant dense<0.000000e+00> : vector<16x128xf32>
    %2 = tpu.matmul %0, %1, %cst {dimension_numbers = #tpu.dot_dimension_numbers<[1], [0], [0], [1], [0, 0, 1, 1], [], []>} : vector<16x128xbf16>, vector<128x128xbf16>, vector<16x128xf32> -> vector<16x128xf32>
    %c0_3 = arith.constant 0 : index
    %c0_4 = arith.constant 0 : index
    %3 = vector.load %arg5[%c0_3, %c0_4] : memref<16x128xf32, #tpu.memory_space<vmem>>, vector<16x128xf32>
    tpu.vector_store %arg5[%c0_3, %c0_4], %2 {strides = array<i32>} : memref<16x128xf32, #tpu.memory_space<vmem>>, vector<16x128xf32>,
    %cst_5 = arith.constant dense<0.000000e+00> : vector<128xf32>
    %4 = vector.multi_reduction <add>, %2, %cst_5 [0] : vector<16x128xf32> to vector<128xf32>
    %5 = vector.shape_cast %4 : vector<128xf32> to vector<1x128xf32>
    %6 = arith.mulf %2, %2 : vector<16x128xf32>
    %cst_6 = arith.constant dense<0.000000e+00> : vector<128xf32>
    %7 = vector.multi_reduction <add>, %6, %cst_6 [0] : vector<16x128xf32> to vector<128xf32>
    %8 = vector.shape_cast %7 : vector<128xf32> to vector<1x128xf32>
    %c0_7 = arith.constant 0 : index
    %c0_8 = arith.constant 0 : index
    %9 = vector.load %arg3[%c0_7, %c0_8] : memref<16x128xbf16, #tpu.memory_space<vmem>>, vector<16x128xbf16>
    %c0_9 = arith.constant 0 : index
    %c0_10 = arith.constant 0 : index
    %10 = vector.load %arg4[%c0_9, %c0_10] : memref<128x128xbf16, #tpu.memory_space<vmem>>, vector<128x128xbf16>
    %cst_11 = arith.constant dense<0.000000e+00> : vector<16x128xf32>
    %11 = tpu.matmul %9, %10, %cst_11 {dimension_numbers = #tpu.dot_dimension_numbers<[1], [0], [0], [1], [0, 0, 1, 1], [], []>} : vector<16x128xbf16>, vector<128x128xbf16>, vector<16x128xf32> -> vector<16x128xf32>
    %c0_12 = arith.constant 0 : index
    %c0_13 = arith.constant 0 : index
    %12 = vector.load %arg6[%c0_12, %c0_13] : memref<16x128xf32, #tpu.memory_space<vmem>>, vector<16x128xf32>
    tpu.vector_store %arg6[%c0_12, %c0_13], %11 {strides = array<i32>} : memref<16x128xf32, #tpu.memory_space<vmem>>, vector<16x128xf32>,
    %cst_14 = arith.constant dense<0.000000e+00> : vector<128xf32>
    %13 = vector.multi_reduction <add>, %11, %cst_14 [0] : vector<16x128xf32> to vector<128xf32>
    %14 = vector.shape_cast %13 : vector<128xf32> to vector<1x128xf32>
    %15 = arith.mulf %11, %11 : vector<16x128xf32>
    %cst_15 = arith.constant dense<0.000000e+00> : vector<128xf32>
    %16 = vector.multi_reduction <add>, %15, %cst_15 [0] : vector<16x128xf32> to vector<128xf32>
    %17 = vector.shape_cast %16 : vector<128xf32> to vector<1x128xf32>
    %cst_16 = arith.constant 0.000000e+00 : f32
    %18 = vector.broadcast %cst_16 : f32 to vector<4x128xf32>
    %19 = tpu.concatenate %5, %8, %14, %17, %18 in 0 : vector<1x128xf32>, vector<1x128xf32>, vector<1x128xf32>, vector<1x128xf32>, vector<4x128xf32> -> vector<8x128xf32>
    %c0_17 = arith.constant 0 : index
    %c0_18 = arith.constant 0 : index
    %20 = vector.load %arg7[%c0_17, %c0_18] : memref<8x128xf32, #tpu.memory_space<vmem>>, vector<8x128xf32>
    tpu.vector_store %arg7[%c0_17, %c0_18], %19 {strides = array<i32>} : memref<8x128xf32, #tpu.memory_space<vmem>>, vector<8x128xf32>,
    return
  }
  func.func @transform_0(%arg0: i32) -> (i32, i32) {
    %c0_i32 = arith.constant 0 : i32
    %c0_i32_0 = arith.constant 0 : i32
    return %arg0, %c0_i32 : i32, i32
  }
  func.func @transform_1(%arg0: i32) -> (i32, i32) {
    %c0_i32 = arith.constant 0 : i32
    %c0_i32_0 = arith.constant 0 : i32
    %c0_i32_1 = arith.constant 0 : i32
    return %c0_i32, %c0_i32_0 : i32, i32
  }
  func.func @transform_2(%arg0: i32) -> (i32, i32) {
    %c0_i32 = arith.constant 0 : i32
    %c0_i32_0 = arith.constant 0 : i32
    return %arg0, %c0_i32 : i32, i32
  }
  func.func @transform_3(%arg0: i32) -> (i32, i32) {
    %c0_i32 = arith.constant 0 : i32
    %c0_i32_0 = arith.constant 0 : i32
    %c0_i32_1 = arith.constant 0 : i32
    return %c0_i32, %c0_i32_0 : i32, i32
  }
  func.func @transform_4(%arg0: i32) -> (i32, i32) {
    %c0_i32 = arith.constant 0 : i32
    %c0_i32_0 = arith.constant 0 : i32
    return %arg0, %c0_i32 : i32, i32
  }
  func.func @transform_5(%arg0: i32) -> (i32, i32) {
    %c0_i32 = arith.constant 0 : i32
    %c0_i32_0 = arith.constant 0 : i32
    return %arg0, %c0_i32 : i32, i32
  }
  func.func @transform_6(%arg0: i32) -> (i32, i32) {
    %c0_i32 = arith.constant 0 : i32
    %c0_i32_0 = arith.constant 0 : i32
    return %arg0, %c0_i32 : i32, i32
  }
}

module attributes {stable_mosaic.version = 11 : i64} {
  func.func @_norm_kernel(%arg0: i32, %arg1: memref<16x128xf32, #tpu.memory_space<vmem>>, %arg2: memref<16x128xf32, #tpu.memory_space<vmem>>, %arg3: memref<8x128xf32, #tpu.memory_space<vmem>>, %arg4: memref<16x128xf32, #tpu.memory_space<vmem>>) attributes {dimension_semantics = [#tpu.dimension_semantics<parallel>], iteration_bounds = array<i64: 1>, scalar_prefetch = 0 : i64, scratch_operands = 0 : i64, tpu.core_type = #tpu.core_type<tc>, window_params = [{transform_indices = @transform_0, window_bounds = array<i64: 16, 128>}, {transform_indices = @transform_1, window_bounds = array<i64: 16, 128>}, {pipeline_mode = #tpu.pipeline_mode<synchronous>, transform_indices = @transform_2, window_bounds = array<i64: 8, 128>}, {transform_indices = @transform_3, window_bounds = array<i64: 16, 128>}]} {
    %c0 = arith.constant 0 : index
    %c0_0 = arith.constant 0 : index
    %0 = vector.load %arg3[%c0, %c0_0] : memref<8x128xf32, #tpu.memory_space<vmem>>, vector<8x128xf32>
    %c0_1 = arith.constant 0 : index
    %c0_2 = arith.constant 0 : index
    %1 = vector.load %arg1[%c0_1, %c0_2] : memref<16x128xf32, #tpu.memory_space<vmem>>, vector<16x128xf32>
    %2 = vector.extract_strided_slice %0 {offsets = [0, 0], sizes = [1, 128], strides = [1, 1]} : vector<8x128xf32> to vector<1x128xf32>
    %3 = vector.broadcast %2 : vector<1x128xf32> to vector<16x128xf32>
    %4 = arith.mulf %1, %3 : vector<16x128xf32>
    %5 = vector.extract_strided_slice %0 {offsets = [1, 0], sizes = [1, 128], strides = [1, 1]} : vector<8x128xf32> to vector<1x128xf32>
    %6 = vector.broadcast %5 : vector<1x128xf32> to vector<16x128xf32>
    %7 = arith.addf %4, %6 : vector<16x128xf32>
    %c0_3 = arith.constant 0 : index
    %c0_4 = arith.constant 0 : index
    %8 = vector.load %arg2[%c0_3, %c0_4] : memref<16x128xf32, #tpu.memory_space<vmem>>, vector<16x128xf32>
    %9 = vector.extract_strided_slice %0 {offsets = [2, 0], sizes = [1, 128], strides = [1, 1]} : vector<8x128xf32> to vector<1x128xf32>
    %10 = vector.broadcast %9 : vector<1x128xf32> to vector<16x128xf32>
    %11 = arith.mulf %8, %10 : vector<16x128xf32>
    %12 = vector.extract_strided_slice %0 {offsets = [3, 0], sizes = [1, 128], strides = [1, 1]} : vector<8x128xf32> to vector<1x128xf32>
    %13 = vector.broadcast %12 : vector<1x128xf32> to vector<16x128xf32>
    %14 = arith.addf %11, %13 : vector<16x128xf32>
    %15 = arith.addf %7, %14 : vector<16x128xf32>
    %cst = arith.constant 0.000000e+00 : f32
    %16 = vector.broadcast %cst : f32 to vector<16x128xf32>
    %17 = arith.maximumf %15, %16 : vector<16x128xf32>
    %c0_5 = arith.constant 0 : index
    %c0_6 = arith.constant 0 : index
    %18 = vector.load %arg4[%c0_5, %c0_6] : memref<16x128xf32, #tpu.memory_space<vmem>>, vector<16x128xf32>
    tpu.vector_store %arg4[%c0_5, %c0_6], %17 {strides = array<i32>} : memref<16x128xf32, #tpu.memory_space<vmem>>, vector<16x128xf32>,
    return
  }
  func.func @transform_0(%arg0: i32) -> (i32, i32) {
    %c0_i32 = arith.constant 0 : i32
    %c0_i32_0 = arith.constant 0 : i32
    return %arg0, %c0_i32 : i32, i32
  }
  func.func @transform_1(%arg0: i32) -> (i32, i32) {
    %c0_i32 = arith.constant 0 : i32
    %c0_i32_0 = arith.constant 0 : i32
    return %arg0, %c0_i32 : i32, i32
  }
  func.func @transform_2(%arg0: i32) -> (i32, i32) {
    %c0_i32 = arith.constant 0 : i32
    %c0_i32_0 = arith.constant 0 : i32
    %c0_i32_1 = arith.constant 0 : i32
    return %c0_i32, %c0_i32_0 : i32, i32
  }
  func.func @transform_3(%arg0: i32) -> (i32, i32) {
    %c0_i32 = arith.constant 0 : i32
    %c0_i32_0 = arith.constant 0 : i32
    return %arg0, %c0_i32 : i32, i32
  }
}

</mosaic_0001>

<bundles_post_ra>
// kernel: residual_block_2d.4
= control target key start
LH: loop header
LB: loop body
LE: loop exit
PB: predicated region body
PF: predicated region fallthrough
CT: control target
= control target key end

     0   :  { %s878_s12 = smov 0   ;;  %s1012_s0 = inlined_call_operand.vmem [shape: bf16[512,256], index: 0, kind: input, shape index: {}]   ;;  %s1013_s1 = inlined_call_operand.vmem [shape: bf16[256,128], index: 1, kind: input, shape index: {}]   ;;  %s1014_s2 = inlined_call_operand.vmem [shape: f32[512,128], index: 2, kind: output, shape index: {0}]   ;;  %s1015_s3 = inlined_call_operand.vmem [shape: f32[32,128], index: 3, kind: output, shape index: {1}]  }
   0x1 LB: > { %s884_s13 = sadd.s32 4294967295, %s856_s12   ;;  %p680_p0 = scmp.ge.s32.totalorder %s856_s12, 1  ;;  %s856_s12 = sphi %s878_s12, %s14_s12  }
   0x2   : > { %p142_p1 = scmp.lt.s32.totalorder %s856_s12, 5 }
   0x4   : > { %p143_p2 = pnand %p680_p0, %p142_p1 }
   0x5   : > { %v810_v0 = vld [vmem:[%s1013_s1 + $0x40] sm:$0xff] (!%p143_p2)   ;;  %s681_s16 = sshll.u32 (!%p143_p2), %s884_s13, 4  ;;  %v812_v2 = vld [vmem:[%s1013_s1 + $0x48] sm:$0xff] (!%p143_p2)   ;;  %v814_v4 = vld [vmem:[%s1013_s1 + $0x50] sm:$0xff] (!%p143_p2)   ;;  %p184_p4 = scmp.lt.s32.totalorder (!%p143_p2), %s884_s13, 3  ;;  %vm584_vm0 = vcmask (!%p143_p2), 1040384  }
   0x6   : > { %146 = sbr.rel (%p143_p2) target bundleno = 314 (0x13a), region = 28  ;;  %v811_v1 = vld [vmem:[%s1013_s1] sm:$0xff] (!%p143_p2)   ;;  %722 = vmatprep.subr.bf16.mxu0 (!%p143_p2), %v810_v0  ;;  %786 = vmatprep.subr.bf16.mxu1 (!%p143_p2), %v810_v0  ;;  %v813_v3 = vld [vmem:[%s1013_s1 + $0x8] sm:$0xff] (!%p143_p2)   ;;  %p172_p3 = scmp.lt.s32.totalorder (!%p143_p2), %s681_s16, 63  ;;  %v815_v5 = vld [vmem:[%s1013_s1 + $0x10] sm:$0xff] (!%p143_p2)   ;;  %vm586_vm1 = vcmask (!%p143_p2), 1041408  }
   0x7   : > { %723 = vmatpush3.bf16.msra.mxu0 (!%p143_p2), %v811_v1  ;;  %794 = vmatpush3.bf16.msra.mxu1 (!%p143_p2), %v811_v1  ;;  %v816_v6 = vld [vmem:[%s1013_s1 + $0x58] sm:$0xff] (!%p143_p2)   ;;  %v818_v8 = vld [vmem:[%s1013_s1 + $0x60] sm:$0xff] (!%p143_p2)   ;;  %v820_v10 = vld [vmem:[%s1013_s1 + $0x68] sm:$0xff] (!%p143_p2)  }
   0x8   : > { %724 = vmatprep.subr.bf16.mxu0 (!%p143_p2), %v812_v2  ;;  %787 = vmatprep.subr.bf16.mxu1 (!%p143_p2), %v812_v2  ;;  %v817_v7 = vld [vmem:[%s1013_s1 + $0x18] sm:$0xff] (!%p143_p2)   ;;  %v819_v9 = vld [vmem:[%s1013_s1 + $0x20] sm:$0xff] (!%p143_p2)   ;;  %v821_v12 = vld [vmem:[%s1013_s1 + $0x28] sm:$0xff] (!%p143_p2)  }
   0x9   : > { %v822_v14 = vld [vmem:[%s1013_s1 + $0x70] sm:$0xff] (!%p143_p2)   ;;  %v824_v16 = vld [vmem:[%s1013_s1 + $0x78] sm:$0xff] (!%p143_p2)  }
   0xa   : > { %v823_v15 = vld [vmem:[%s1013_s1 + $0x30] sm:$0xff] (!%p143_p2)   ;;  %v825_v17 = vld [vmem:[%s1013_s1 + $0x38] sm:$0xff] (!%p143_p2)  }
   0xb   : > { %725 = vmatpush3.bf16.msra.mxu0 (!%p143_p2), %v813_v3  ;;  %795 = vmatpush3.bf16.msra.mxu1 (!%p143_p2), %v813_v3 }
   0xc   : > { %726 = vmatprep.subr.bf16.mxu0 (!%p143_p2), %v814_v4  ;;  %788 = vmatprep.subr.bf16.mxu1 (!%p143_p2), %v814_v4 }
   0xd   : > { %s1017_s16 = smov (!%p172_p3, %s681_s16), 63  ;;  %s1019_s13 = smov (!%p184_p4, %s884_s13), 3 }
   0xe   : > { %s721_s4 = sshll.u32 %s1017_s16, 3  ;;  %s686_s16 = sshll.u32 %s1019_s13, 3 }
   0xf   : > { %727 = vmatpush3.bf16.msra.mxu0 %v815_v5  ;;  %796 = vmatpush3.bf16.msra.mxu1 %v815_v5  ;;  %s924_s9 = scalar_lea.vmem %s1012_s0, %s721_s4  ;;  %s968_s29 = scalar_lea.vmem %s1014_s2, %s721_s4 }
  0x10   : > { %728 = vmatprep.subr.bf16.mxu0 %v816_v6  ;;  %789 = vmatprep.subr.bf16.mxu1 %v816_v6  ;;  %v828_v11 = vld [vmem:[%s924_s9 + $0x4] ss:$8 sps:$4 sm:$0xff]   ;;  %v826_v18 = vld [vmem:[%s924_s9] ss:$8 sps:$4 sm:$0xff]   ;;  %v829_v20 = vld [vmem:[%s924_s9 + $0x14] ss:$8 sps:$4 sm:$0xff]   ;;  %s187_s5 = scalar_lea.vmem %s1015_s3, %s686_s16 }
  0x11   : > { %v834_v13 = vld [vmem:[%s924_s9 + $0x44] ss:$8 sps:$4 sm:$0xff]   ;;  %445 = vmatprep.mubr.bf16.mxu0 %v828_v11  ;;  %v832_v19 = vld [vmem:[%s924_s9 + $0x40] ss:$8 sps:$4 sm:$0xff]   ;;  %v838_v21 = vld [vmem:[%s924_s9 + $0x54] ss:$8 sps:$4 sm:$0xff]  }
  0x12   : > { %477 = vmatprep.mubr.bf16.mxu1 %v834_v13  ;;  %v831_v22 = vld [vmem:[%s924_s9 + $0x10] ss:$8 sps:$4 sm:$0xff]   ;;  %v835_v24 = vld [vmem:[%s924_s9 + $0x24] ss:$8 sps:$4 sm:$0xff]   ;;  %v837_v26 = vld [vmem:[%s924_s9 + $0x20] ss:$8 sps:$4 sm:$0xff]  }
  0x13   : > { %729 = vmatpush3.bf16.msra.mxu0 %v817_v7  ;;  %797 = vmatpush3.bf16.msra.mxu1 %v817_v7  ;;  %v840_v23 = vld [vmem:[%s924_s9 + $0x50] ss:$8 sps:$4 sm:$0xff]   ;;  %v844_v25 = vld [vmem:[%s924_s9 + $0x64] ss:$8 sps:$4 sm:$0xff]   ;;  %v846_v27 = vld [vmem:[%s924_s9 + $0x60] ss:$8 sps:$4 sm:$0xff]  }
  0x14   : > { %730 = vmatprep.subr.bf16.mxu0 %v818_v8  ;;  %790 = vmatprep.subr.bf16.mxu1 %v818_v8  ;;  %v841_v28 = vld [vmem:[%s924_s9 + $0x34] ss:$8 sps:$4 sm:$0xff]   ;;  %v843_v30 = vld [vmem:[%s924_s9 + $0x30] ss:$8 sps:$4 sm:$0xff]  }
  0x15   : > { %v847_v29 = vld [vmem:[%s924_s9 + $0x74] ss:$8 sps:$4 sm:$0xff]   ;;  %v849_v31 = vld [vmem:[%s924_s9 + $0x70] ss:$8 sps:$4 sm:$0xff]  }
  0x17   : > { %731 = vmatpush3.bf16.msra.mxu0 %v819_v9  ;;  %798 = vmatpush3.bf16.msra.mxu1 %v819_v9 }
  0x18   : > { %732 = vmatprep.subr.bf16.mxu0 %v820_v10  ;;  %791 = vmatprep.subr.bf16.mxu1 %v820_v10 }
  0x1b   : > { %733 = vmatpush3.bf16.msra.mxu0 %v821_v12  ;;  %799 = vmatpush3.bf16.msra.mxu1 %v821_v12 }
  0x1c   : > { %734 = vmatprep.subr.bf16.mxu0 %v822_v14  ;;  %792 = vmatprep.subr.bf16.mxu1 %v822_v14 }
  0x1f   : > { %735 = vmatpush3.bf16.msra.mxu0 %v823_v15  ;;  %800 = vmatpush3.bf16.msra.mxu1 %v823_v15 }
  0x20   : > { %736 = vmatprep.subr.bf16.mxu0 %v824_v16  ;;  %793 = vmatprep.subr.bf16.mxu1 %v824_v16 }
  0x23   : > { %737 = vmatpush3.bf16.msra.mxu0 %v825_v17  ;;  %801 = vmatpush3.bf16.msra.mxu1 %v825_v17 }
  0x26   : > { %446 = vmatmul.mubr.bf16.vlgmr.msra.gmra.mrb[0].mxu0 %v826_v18  ;;  %478 = vmatmul.mubr.bf16.vlgmr.msra.gmra.mrb[0].mxu1 %v832_v19 }
  0x27   : > { %453 = vmatprep.mubr.bf16.mxu0 %v829_v20  ;;  %485 = vmatprep.mubr.bf16.mxu1 %v838_v21 }
  0x2e   : > { %454 = vmatmul.mubr.bf16.gmra.mrb[4].mxu0 %v831_v22  ;;  %486 = vmatmul.mubr.bf16.gmra.mrb[4].mxu1 %v840_v23 }
  0x2f   : > { %461 = vmatprep.mubr.bf16.mxu0 %v835_v24  ;;  %493 = vmatprep.mubr.bf16.mxu1 %v844_v25 }
  0x36   : > { %462 = vmatmul.mubr.bf16.gmra.mrb[8].mxu0 %v837_v26  ;;  %494 = vmatmul.mubr.bf16.gmra.mrb[8].mxu1 %v846_v27 }
  0x37   : > { %469 = vmatprep.mubr.bf16.mxu0 %v841_v28  ;;  %501 = vmatprep.mubr.bf16.mxu1 %v847_v29 }
  0x3e   : > { %470 = vmatmul.mubr.bf16.gmra.mrb[12].mxu0 %v843_v30  ;;  %502 = vmatmul.mubr.bf16.gmra.mrb[12].mxu1 %v849_v31 }
  0xf9   : > { %v738_v32 = vpop.f32.mrb[0].mxu0  ;;  %v762_v33 = vpop.f32.mrb[0].mxu1 }
  0xfa   : > { %v739_v34 = vpop.f32.mrb[1].mxu0  ;;  %v763_v35 = vpop.f32.mrb[1].mxu1 }
  0xfb   : > { %v740_v36 = vadd.f32 %v739_v34, %v738_v32  ;;  %v741_v37 = vpop.f32.mrb[2].mxu0  ;;  %v970_v38 = vadd.f32 %v763_v35, %v762_v33  ;;  %v765_v39 = vpop.f32.mrb[2].mxu1 }
  0xfc   : > { %v742_v40 = vpop.f32.mrb[3].mxu0  ;;  %v766_v41 = vpop.f32.mrb[3].mxu1 }
  0xfd   : > { %510 = vst [vmem:[%s968_s29] sm:$0xff] %v740_v36  ;;  %v743_v42 = vadd.f32 %v742_v40, %v741_v37  ;;  %518 = vst [vmem:[%s968_s29 + $0x40] sm:$0xff] %v970_v38  ;;  %v975_v43 = vadd.f32 %v766_v41, %v765_v39  ;;  %v547_v44 = vmul.f32 %v740_v36, %v740_v36 }
  0xfe   : > { %v555_v37 = vmul.f32 %v970_v38, %v970_v38 }
  0xff   : > { %511 = vst [vmem:[%s968_s29 + $0x8] sm:$0xff] %v743_v42  ;;  %v526_v45 = vadd.f32 %v743_v42, %v740_v36  ;;  %v548_v46 = vmul.f32 %v743_v42, %v743_v42  ;;  %519 = vst [vmem:[%s968_s29 + $0x48] sm:$0xff] %v975_v43  ;;  %v556_v41 = vmul.f32 %v975_v43, %v975_v43 }
 0x101   : > { %v563_v47 = vadd.f32 %v548_v46, %v547_v44  ;;  %v744_v48 = vpop.f32.mrb[4].mxu0  ;;  %v768_v49 = vpop.f32.mrb[4].mxu1 }
 0x102   : > { %v745_v50 = vpop.f32.mrb[5].mxu0  ;;  %v769_v51 = vpop.f32.mrb[5].mxu1 }
 0x103   : > { %v746_v52 = vadd.f32 %v745_v50, %v744_v48  ;;  %v747_v53 = vpop.f32.mrb[6].mxu0  ;;  %v980_v54 = vadd.f32 %v769_v51, %v768_v49  ;;  %v771_v55 = vpop.f32.mrb[6].mxu1 }
 0x104   : > { %v748_v56 = vpop.f32.mrb[7].mxu0  ;;  %v772_v57 = vpop.f32.mrb[7].mxu1 }
 0x105   : > { %512 = vst [vmem:[%s968_s29 + $0x10] sm:$0xff] %v746_v52  ;;  %v527_v58 = vadd.f32 %v746_v52, %v526_v45  ;;  %v549_v59 = vmul.f32 %v746_v52, %v746_v52  ;;  %v749_v60 = vadd.f32 %v748_v56, %v747_v53  ;;  %520 = vst [vmem:[%s968_s29 + $0x50] sm:$0xff] %v980_v54 }
 0x106   : > { %v773_v61 = vadd.f32 %v772_v57, %v771_v55  ;;  %v557_v45 = vmul.f32 %v980_v54, %v980_v54 }
 0x107   : > { %v564_v62 = vadd.f32 %v563_v47, %v549_v59  ;;  %513 = vst [vmem:[%s968_s29 + $0x18] sm:$0xff] %v749_v60  ;;  %v528_v63 = vadd.f32 %v749_v60, %v527_v58  ;;  %v550_v0 = vmul.f32 %v749_v60, %v749_v60 }
 0x108   : > { %521 = vst [vmem:[%s968_s29 + $0x58] sm:$0xff] %v773_v61  ;;  %v558_v48 = vmul.f32 %v773_v61, %v773_v61 }
 0x109   : > { %v565_v1 = vadd.f32 %v564_v62, %v550_v0  ;;  %v750_v2 = vpop.f32.mrb[8].mxu0  ;;  %v774_v3 = vpop.f32.mrb[8].mxu1 }
 0x10a   : > { %v751_v4 = vpop.f32.mrb[9].mxu0  ;;  %v775_v5 = vpop.f32.mrb[9].mxu1 }
 0x10b   : > { %v752_v6 = vadd.f32 %v751_v4, %v750_v2  ;;  %v753_v7 = vpop.f32.mrb[10].mxu0  ;;  %v776_v8 = vadd.f32 %v775_v5, %v774_v3  ;;  %v777_v9 = vpop.f32.mrb[10].mxu1 }
 0x10c   : > { %v754_v10 = vpop.f32.mrb[11].mxu0  ;;  %v778_v11 = vpop.f32.mrb[11].mxu1 }
 0x10d   : > { %514 = vst [vmem:[%s968_s29 + $0x20] sm:$0xff] %v752_v6  ;;  %v529_v12 = vadd.f32 %v752_v6, %v528_v63  ;;  %v551_v13 = vmul.f32 %v752_v6, %v752_v6  ;;  %v755_v14 = vadd.f32 %v754_v10, %v753_v7  ;;  %522 = vst [vmem:[%s968_s29 + $0x60] sm:$0xff] %v776_v8 }
 0x10e   : > { %v779_v15 = vadd.f32 %v778_v11, %v777_v9  ;;  %v559_v52 = vmul.f32 %v776_v8, %v776_v8 }
 0x10f   : > { %v566_v16 = vadd.f32 %v565_v1, %v551_v13  ;;  %515 = vst [vmem:[%s968_s29 + $0x28] sm:$0xff] %v755_v14  ;;  %v530_v17 = vadd.f32 %v755_v14, %v529_v12  ;;  %v552_v18 = vmul.f32 %v755_v14, %v755_v14 }
 0x110   : > { %523 = vst [vmem:[%s968_s29 + $0x68] sm:$0xff] %v779_v15  ;;  %v560_v56 = vmul.f32 %v779_v15, %v779_v15 }
 0x111   : > { %v567_v19 = vadd.f32 %v566_v16, %v552_v18  ;;  %v756_v20 = vpop.f32.mrb[12].mxu0  ;;  %v780_v21 = vpop.f32.mrb[12].mxu1 }
 0x112   : > { %v757_v22 = vpop.f32.mrb[13].mxu0  ;;  %v781_v23 = vpop.f32.mrb[13].mxu1 }
 0x113   : > { %v758_v24 = vadd.f32 %v757_v22, %v756_v20  ;;  %v759_v25 = vpop.f32.mrb[14].mxu0  ;;  %v782_v26 = vadd.f32 %v781_v23, %v780_v21  ;;  %v783_v27 = vpop.f32.mrb[14].mxu1 }
 0x114   : > { %v760_v28 = vpop.f32.mrb[15].mxu0  ;;  %v784_v29 = vpop.f32.mrb[15].mxu1 }
 0x115   : > { %516 = vst [vmem:[%s968_s29 + $0x30] sm:$0xff] %v758_v24  ;;  %v531_v30 = vadd.f32 %v758_v24, %v530_v17  ;;  %v553_v31 = vmul.f32 %v758_v24, %v758_v24  ;;  %v761_v32 = vadd.f32 %v760_v28, %v759_v25  ;;  %524 = vst [vmem:[%s968_s29 + $0x70] sm:$0xff] %v782_v26 }
 0x116   : > { %v785_v33 = vadd.f32 %v784_v29, %v783_v27  ;;  %v561_v57 = vmul.f32 %v782_v26, %v782_v26 }
 0x117   : > { %v568_v34 = vadd.f32 %v567_v19, %v553_v31  ;;  %517 = vst [vmem:[%s968_s29 + $0x38] sm:$0xff] %v761_v32  ;;  %v532_v35 = vadd.f32 %v761_v32, %v531_v30  ;;  %v554_v36 = vmul.f32 %v761_v32, %v761_v32 }
 0x118   : > { %525 = vst [vmem:[%s968_s29 + $0x78] sm:$0xff] %v785_v33  ;;  %v562_v62 = vmul.f32 %v785_v33, %v785_v33 }
 0x119   : > { %v533_v39 = vadd.f32 %v970_v38, %v532_v35  ;;  %v569_v40 = vadd.f32 %v568_v34, %v554_v36 }
 0x11b   : > { %v534_v42 = vadd.f32 %v975_v43, %v533_v39  ;;  %v570_v44 = vadd.f32 %v569_v40, %v555_v37 }
 0x11d   : > { %v571_v46 = vadd.f32 %v570_v44, %v556_v41  ;;  %v535_v47 = vadd.f32 %v980_v54, %v534_v42 }
 0x11f   : > { %v536_v49 = vadd.f32 %v773_v61, %v535_v47  ;;  %v572_v50 = vadd.f32 %v571_v46, %v557_v45 }
 0x121   : > { %v537_v51 = vadd.f32 %v776_v8, %v536_v49  ;;  %v573_v38 = vadd.f32 %v572_v50, %v558_v48 }
 0x123   : > { %v574_v53 = vadd.f32 %v573_v38, %v559_v52  ;;  %v538_v55 = vadd.f32 %v779_v15, %v537_v51 }
 0x125   : > { %v575_v43 = vadd.f32 %v574_v53, %v560_v56  ;;  %v539_v58 = vadd.f32 %v782_v26, %v538_v55 }
 0x127   : > { %v576_v59 = vadd.f32 %v575_v43, %v561_v57  ;;  %v540_v60 = vadd.f32 %v785_v33, %v539_v58 }
 0x129   : > { %v541_v63 = vrot.slane %v540_v60, 4  ;;  %v577_v0 = vadd.f32 %v576_v59, %v562_v62 }
 0x12b   : > { %v542_v54 = vadd.f32 %v541_v63, %v540_v60  ;;  %v578_v61 = vrot.slane %v577_v0, 4 }
 0x12d   : > { %v543_v1 = vrot.slane %v542_v54, 2  ;;  %v579_v2 = vadd.f32 %v578_v61, %v577_v0 }
 0x12f   : > { %v544_v3 = vadd.f32 %v543_v1, %v542_v54  ;;  %v580_v4 = vrot.slane %v579_v2, 2 }
 0x131   : > { %v545_v5 = vrot.slane %v544_v3, 1  ;;  %v581_v6 = vadd.f32 %v580_v4, %v579_v2 }
 0x133   : > { %v582_v7 = vrot.slane %v581_v6, 1  ;;  %v546_v8 = vadd.f32 %v545_v5, %v544_v3 }
 0x135   : > { %v583_v9 = vadd.f32 %v582_v7, %v581_v6 }
 0x137   : > { %v585_v10 = vsel %vm584_vm0, %v546_v8, %v583_v9 }
 0x138   : > { %v587_v11 = vsel %vm586_vm1, %v585_v10, 0.0 }
 0x139   : > { %588 = vst [vmem:[%s187_s5] sm:$0xff] %v587_v11 }
 0x13a PF: > { %s14_s12 = sadd.s32 1, %s856_s12  }
 0x13b   : > { %p11_p5 = scmp.ge.s32.totalorder %s14_s12, 6  }
 0x13d   :  { %13 = sbr.rel (!%p11_p5) target bundleno = 1 (0x1), region = 70 }

// kernel: residual_block_2d.5
= control target key start
LH: loop header
LB: loop body
LE: loop exit
PB: predicated region body
PF: predicated region fallthrough
CT: control target
= control target key end

     0   :  { %s477_s9 = smov 0   ;;  %s565_s0 = inlined_call_operand.vmem [shape: f32[512,128], index: 0, kind: input, shape index: {}]   ;;  %s566_s1 = inlined_call_operand.vmem [shape: f32[8,128], index: 1, kind: input, shape index: {}]   ;;  %s567_s2 = inlined_call_operand.vmem [shape: bf16[512,128], index: 2, kind: output, shape index: {}]  }
   0x1 LB: > { %s356_s10 = sadd.s32 4294967295, %s460_s9   ;;  %p360_p0 = scmp.ge.s32.totalorder %s460_s9, 1  ;;  %s460_s9 = sphi %s477_s9, %s12_s9  }
   0x2   : > { %p113_p1 = scmp.lt.s32.totalorder %s460_s9, 5 }
   0x4   : > { %p114_p2 = pnand %p360_p0, %p113_p1 }
   0x5   : > { %s361_s11 = sshll.u32 (!%p114_p2), %s356_s10, 4  ;;  %v164_v0 = vlaneseq (!%p114_p2)  ;;  %v147_v2 = vld [vmem:[%s566_s1] sm:$0xff] (!%p114_p2) }
   0x6   : > { %117 = sbr.rel (%p114_p2) target bundleno = 37 (0x25), region = 28  ;;  %p136_p3 = scmp.lt.s32.totalorder (!%p114_p2), %s361_s11, 63 }
   0x7   : > { %v165_v1 = vshrl.u32 (!%p114_p2), %v164_v0, 7 }
   0x9   : > { %v166_v3 = vsub.s32 (!%p114_p2), 0, %v165_v1  ;;  %v186_v4 = vsub.s32 (!%p114_p2), 1, %v165_v1 }
   0xb   : > { %v496_v5 = vrot.slane (!%p114_p2), %v147_v2, %v166_v3  ;;  %v498_v6 = vrot.slane (!%p114_p2), %v147_v2, %v186_v4 }
   0xd   : > { %s569_s11 = smov (!%p136_p3, %s361_s11), 63 }
   0xe   : > { %s362_s14 = sshll.u32 %s569_s11, 3  ;;  %s364_s18 = sshll.u32 %s569_s11, 2 }
   0xf   : > { %s494_s17 = scalar_lea.vmem %s565_s0, %s362_s14  ;;  %s530_s21 = scalar_lea.vmem %s567_s2, %s364_s18 }
  0x10   : > { %v148_v7 = vld [vmem:[%s494_s17] sm:$0xff]  ;;  %v149_v8 = vld [vmem:[%s494_s17 + $0x8] sm:$0xff]  ;;  %v150_v9 = vld [vmem:[%s494_s17 + $0x10] sm:$0xff] }
  0x11   : > { %v168_v10 = vmul.f32 %v496_v5, %v148_v7  ;;  %v169_v11 = vmul.f32 %v496_v5, %v149_v8  ;;  %v151_v12 = vld [vmem:[%s494_s17 + $0x18] sm:$0xff]  ;;  %v170_v13 = vmul.f32 %v496_v5, %v150_v9  ;;  %v152_v14 = vld [vmem:[%s494_s17 + $0x20] sm:$0xff]  ;;  %v153_v15 = vld [vmem:[%s494_s17 + $0x28] sm:$0xff] }
  0x12   : > { %v171_v16 = vmul.f32 %v496_v5, %v151_v12  ;;  %v172_v17 = vmul.f32 %v496_v5, %v152_v14  ;;  %v173_v18 = vmul.f32 %v496_v5, %v153_v15  ;;  %v154_v19 = vld [vmem:[%s494_s17 + $0x30] sm:$0xff]  ;;  %v155_v20 = vld [vmem:[%s494_s17 + $0x38] sm:$0xff]  ;;  %v156_v29 = vld [vmem:[%s494_s17 + $0x40] sm:$0xff] }
  0x13   : > { %v188_v21 = vadd.f32 %v498_v6, %v168_v10  ;;  %v189_v22 = vadd.f32 %v498_v6, %v169_v11  ;;  %v190_v23 = vadd.f32 %v498_v6, %v170_v13  ;;  %v174_v24 = vmul.f32 %v496_v5, %v154_v19  ;;  %v157_v30 = vld [vmem:[%s494_s17 + $0x48] sm:$0xff]  ;;  %v158_v35 = vld [vmem:[%s494_s17 + $0x50] sm:$0xff]  ;;  %v159_v40 = vld [vmem:[%s494_s17 + $0x58] sm:$0xff] }
  0x14   : > { %v191_v25 = vadd.f32 %v498_v6, %v171_v16  ;;  %v192_v26 = vadd.f32 %v498_v6, %v172_v17  ;;  %v193_v27 = vadd.f32 %v498_v6, %v173_v18  ;;  %v175_v28 = vmul.f32 %v496_v5, %v155_v20  ;;  %v160_v41 = vld [vmem:[%s494_s17 + $0x60] sm:$0xff]  ;;  %v161_v46 = vld [vmem:[%s494_s17 + $0x68] sm:$0xff]  ;;  %v162_v47 = vld [vmem:[%s494_s17 + $0x70] sm:$0xff] }
  0x15   : > { %v204_v31 = vmax.f32 %v188_v21, 0.0  ;;  %v205_v32 = vmax.f32 %v189_v22, 0.0  ;;  %v206_v33 = vmax.f32 %v190_v23, 0.0  ;;  %v194_v34 = vadd.f32 %v498_v6, %v174_v24  ;;  %v163_v56 = vld [vmem:[%s494_s17 + $0x78] sm:$0xff] }
  0x16   : > { %v207_v36 = vmax.f32 %v191_v25, 0.0  ;;  %v208_v37 = vmax.f32 %v192_v26, 0.0  ;;  %v209_v38 = vmax.f32 %v193_v27, 0.0  ;;  %v195_v39 = vadd.f32 %v498_v6, %v175_v28 }
  0x17   : > { %v402_v42 = vpack.c.bf16 %v205_v32, %v204_v31  ;;  %v210_v43 = vmax.f32 %v194_v34, 0.0  ;;  %v176_v44 = vmul.f32 %v496_v5, %v156_v29  ;;  %v177_v45 = vmul.f32 %v496_v5, %v157_v30 }
  0x18   : > { %v407_v48 = vpack.c.bf16 %v207_v36, %v206_v33  ;;  %v412_v49 = vpack.c.bf16 %v209_v38, %v208_v37  ;;  %v211_v50 = vmax.f32 %v195_v39, 0.0  ;;  %v178_v51 = vmul.f32 %v496_v5, %v158_v35 }
  0x19   : > { %403 = vst [vmem:[%s530_s21] sm:$0xff] %v402_v42   ;;  %v196_v52 = vadd.f32 %v498_v6, %v176_v44  ;;  %v197_v53 = vadd.f32 %v498_v6, %v177_v45  ;;  %v179_v54 = vmul.f32 %v496_v5, %v159_v40  ;;  %v180_v55 = vmul.f32 %v496_v5, %v160_v41 }
  0x1a   : > { %439 = vst [vmem:[%s530_s21 + $0x8] sm:$0xff] %v407_v48   ;;  %440 = vst [vmem:[%s530_s21 + $0x10] sm:$0xff] %v412_v49   ;;  %v417_v57 = vpack.c.bf16 %v211_v50, %v210_v43  ;;  %v198_v58 = vadd.f32 %v498_v6, %v178_v51  ;;  %v181_v59 = vmul.f32 %v496_v5, %v161_v46 }
  0x1b   : > { %v182_v60 = vmul.f32 %v496_v5, %v162_v47  ;;  %v212_v61 = vmax.f32 %v196_v52, 0.0  ;;  %v213_v62 = vmax.f32 %v197_v53, 0.0  ;;  %v199_v63 = vadd.f32 %v498_v6, %v179_v54 }
  0x1c   : > { %v200_v0 = vadd.f32 %v498_v6, %v180_v55  ;;  %441 = vst [vmem:[%s530_s21 + $0x18] sm:$0xff] %v417_v57   ;;  %v214_v1 = vmax.f32 %v198_v58, 0.0  ;;  %v201_v2 = vadd.f32 %v498_v6, %v181_v59  ;;  %v183_v3 = vmul.f32 %v496_v5, %v163_v56 }
  0x1d   : > { %v202_v4 = vadd.f32 %v498_v6, %v182_v60  ;;  %v422_v7 = vpack.c.bf16 %v213_v62, %v212_v61  ;;  %v215_v8 = vmax.f32 %v199_v63, 0.0 }
  0x1e   : > { %v216_v9 = vmax.f32 %v200_v0, 0.0  ;;  %v217_v10 = vmax.f32 %v201_v2, 0.0  ;;  %v203_v11 = vadd.f32 %v498_v6, %v183_v3 }
  0x1f   : > { %v218_v12 = vmax.f32 %v202_v4, 0.0  ;;  %442 = vst [vmem:[%s530_s21 + $0x20] sm:$0xff] %v422_v7   ;;  %v427_v13 = vpack.c.bf16 %v215_v8, %v214_v1 }
  0x20   : > { %v432_v14 = vpack.c.bf16 %v217_v10, %v216_v9  ;;  %v219_v15 = vmax.f32 %v203_v11, 0.0 }
  0x21   : > { %443 = vst [vmem:[%s530_s21 + $0x28] sm:$0xff] %v427_v13  }
  0x22   : > { %444 = vst [vmem:[%s530_s21 + $0x30] sm:$0xff] %v432_v14   ;;  %v437_v16 = vpack.c.bf16 %v219_v15, %v218_v12 }
  0x24   : > { %445 = vst [vmem:[%s530_s21 + $0x38] sm:$0xff] %v437_v16  }
  0x25 PF: > { %s12_s9 = sadd.s32 1, %s460_s9  }
  0x26   : > { %p9_p4 = scmp.ge.s32.totalorder %s12_s9, 6  }
  0x28   :  { %11 = sbr.rel (!%p9_p4) target bundleno = 1 (0x1), region = 58 }

// kernel: residual_block_2d.6
= control target key start
LH: loop header
LB: loop body
LE: loop exit
PB: predicated region body
PF: predicated region fallthrough
CT: control target
= control target key end

     0   :  { %v400_v0 = vmov 0.0   ;;  %vm401_vm0 = vmmov 0   ;;  %vm283_vm1 = vcmask 1040384   ;;  %vm285_vm2 = vcmask 1041408   ;;  %s506_s1 = inlined_call_operand.vmem [shape: bf16[128,128], index: 1, kind: input, shape index: {}]   ;;  %s507_s3 = inlined_call_operand.vmem [shape: bf16[128,128], index: 3, kind: input, shape index: {}]   ;;  %s508_s0 = inlined_call_operand.vmem [shape: bf16[16,128], index: 0, kind: input, shape index: {}]   ;;  %s509_s2 = inlined_call_operand.vmem [shape: bf16[16,128], index: 2, kind: input, shape index: {}]   ;;  %s510_s4 = inlined_call_operand.vmem [shape: f32[16,128], index: 4, kind: output, shape index: {0}]   ;;  %s511_s5 = inlined_call_operand.vmem [shape: f32[16,128], index: 5, kind: output, shape index: {1}]   ;;  %s512_s6 = inlined_call_operand.vmem [shape: f32[8,128], index: 6, kind: output, shape index: {2}]  }
   0x1   :  { %340 = vmatprep.subr.bf16.mxu0 %v400_v0  ;;  %360 = vmatprep.subr.bf16.mxu1 %v400_v0  ;;  %v382_v1 = vld [vmem:[%s506_s1] sm:$0xff]   ;;  %v384_v3 = vld [vmem:[%s506_s1 + $0x8] sm:$0xff]   ;;  %v386_v5 = vld [vmem:[%s506_s1 + $0x10] sm:$0xff]   ;;  %vm287_vm3 = vcmask 1042432   ;;  %vm289_vm4 = vcmask 1043456  }
   0x2   :  { %v383_v2 = vld [vmem:[%s507_s3] sm:$0xff]   ;;  %356 = vmatprep.mubr.msk.bf16.mxu0 %vm401_vm0, %v400_v0  ;;  %376 = vmatprep.mubr.msk.bf16.mxu1 %vm401_vm0, %v400_v0  ;;  %v385_v4 = vld [vmem:[%s507_s3 + $0x8] sm:$0xff]   ;;  %v387_v6 = vld [vmem:[%s507_s3 + $0x10] sm:$0xff]  }
   0x3   :  { %341 = vmatpush3.bf16.msra.mxu0 %v382_v1  ;;  %361 = vmatpush3.bf16.msra.mxu1 %v383_v2  ;;  %v388_v7 = vld [vmem:[%s506_s1 + $0x18] sm:$0xff]   ;;  %v390_v9 = vld [vmem:[%s506_s1 + $0x20] sm:$0xff]   ;;  %v392_v11 = vld [vmem:[%s506_s1 + $0x28] sm:$0xff]  }
   0x4   :  { %342 = vmatprep.subr.bf16.mxu0 %v400_v0  ;;  %362 = vmatprep.subr.bf16.mxu1 %v400_v0  ;;  %v389_v8 = vld [vmem:[%s507_s3 + $0x18] sm:$0xff]   ;;  %v391_v10 = vld [vmem:[%s507_s3 + $0x20] sm:$0xff]   ;;  %v393_v12 = vld [vmem:[%s507_s3 + $0x28] sm:$0xff]  }
   0x5   :  { %v394_v13 = vld [vmem:[%s506_s1 + $0x30] sm:$0xff]   ;;  %v396_v15 = vld [vmem:[%s506_s1 + $0x38] sm:$0xff]   ;;  %v398_v17 = vld [vmem:[%s508_s0] sm:$0xff]  }
   0x6   :  { %v395_v14 = vld [vmem:[%s507_s3 + $0x30] sm:$0xff]   ;;  %v397_v16 = vld [vmem:[%s507_s3 + $0x38] sm:$0xff]   ;;  %v399_v18 = vld [vmem:[%s509_s2] sm:$0xff]  }
   0x7   :  { %343 = vmatpush3.bf16.msra.mxu0 %v384_v3  ;;  %363 = vmatpush3.bf16.msra.mxu1 %v385_v4 }
   0x8   :  { %344 = vmatprep.subr.bf16.mxu0 %v400_v0  ;;  %364 = vmatprep.subr.bf16.mxu1 %v400_v0 }
   0xb   :  { %345 = vmatpush3.bf16.msra.mxu0 %v386_v5  ;;  %365 = vmatpush3.bf16.msra.mxu1 %v387_v6 }
   0xc   :  { %346 = vmatprep.subr.bf16.mxu0 %v400_v0  ;;  %366 = vmatprep.subr.bf16.mxu1 %v400_v0 }
   0xf   :  { %347 = vmatpush3.bf16.msra.mxu0 %v388_v7  ;;  %367 = vmatpush3.bf16.msra.mxu1 %v389_v8 }
  0x10   :  { %348 = vmatprep.subr.bf16.mxu0 %v400_v0  ;;  %368 = vmatprep.subr.bf16.mxu1 %v400_v0 }
  0x13   :  { %349 = vmatpush3.bf16.msra.mxu0 %v390_v9  ;;  %369 = vmatpush3.bf16.msra.mxu1 %v391_v10 }
  0x14   :  { %350 = vmatprep.subr.bf16.mxu0 %v400_v0  ;;  %370 = vmatprep.subr.bf16.mxu1 %v400_v0 }
  0x17   :  { %351 = vmatpush3.bf16.msra.mxu0 %v392_v11  ;;  %371 = vmatpush3.bf16.msra.mxu1 %v393_v12 }
  0x18   :  { %352 = vmatprep.subr.bf16.mxu0 %v400_v0  ;;  %372 = vmatprep.subr.bf16.mxu1 %v400_v0 }
  0x1b   :  { %353 = vmatpush3.bf16.msra.mxu0 %v394_v13  ;;  %373 = vmatpush3.bf16.msra.mxu1 %v395_v14 }
  0x1c   :  { %354 = vmatprep.subr.bf16.mxu0 %v400_v0  ;;  %374 = vmatprep.subr.bf16.mxu1 %v400_v0 }
  0x1f   :  { %355 = vmatpush3.bf16.msra.mxu0 %v396_v15  ;;  %375 = vmatpush3.bf16.msra.mxu1 %v397_v16 }
  0x22   :  { %357 = vmatmul.mubr.bf16.vlgmr.msra.gmra.mrb[0].mxu0 %v398_v17  ;;  %377 = vmatmul.mubr.bf16.vlgmr.msra.gmra.mrb[0].mxu1 %v399_v18 }
  0xf5   :  { %v127_v19 = vpop.f32.mrb[0].mxu0  ;;  %v258_v20 = vpop.f32.mrb[0].mxu1 }
  0xf6   :  { %134 = vst [vmem:[%s510_s4] sm:$0xff] %v127_v19  ;;  %v358_v21 = vpop.f32.mrb[1].mxu0  ;;  %265 = vst [vmem:[%s511_s5] sm:$0xff] %v258_v20  ;;  %v274_v22 = vmul.f32 %v258_v20, %v258_v20  ;;  %v378_v23 = vpop.f32.mrb[1].mxu1  ;;  %v143_v25 = vmul.f32 %v127_v19, %v127_v19 }
  0xf7   :  { %v130_v24 = vpop.f32.mrb[2].mxu0  ;;  %v261_v28 = vpop.f32.mrb[2].mxu1 }
  0xf8   :  { %135 = vst [vmem:[%s510_s4 + $0x8] sm:$0xff] %v130_v24  ;;  %v136_v26 = vadd.f32 %v130_v24, %v127_v19  ;;  %v144_v27 = vmul.f32 %v130_v24, %v130_v24  ;;  %v359_v29 = vpop.f32.mrb[3].mxu0  ;;  %266 = vst [vmem:[%s511_s5 + $0x8] sm:$0xff] %v261_v28  ;;  %v267_v30 = vadd.f32 %v261_v28, %v258_v20  ;;  %v379_v32 = vpop.f32.mrb[3].mxu1 }
  0xf9   :  { %v275_v31 = vmul.f32 %v261_v28, %v261_v28 }
  0xfa   :  { %v137_v33 = vrot.slane %v136_v26, 4  ;;  %v145_v34 = vadd.f32 %v144_v27, %v143_v25  ;;  %v268_v35 = vrot.slane %v267_v30, 4 }
  0xfb   :  { %v276_v36 = vadd.f32 %v275_v31, %v274_v22 }
  0xfc   :  { %v138_v37 = vadd.f32 %v137_v33, %v136_v26  ;;  %v146_v38 = vrot.slane %v145_v34, 4  ;;  %v269_v39 = vadd.f32 %v268_v35, %v267_v30 }
  0xfd   :  { %v277_v40 = vrot.slane %v276_v36, 4 }
  0xfe   :  { %v139_v41 = vrot.slane %v138_v37, 2  ;;  %v147_v42 = vadd.f32 %v146_v38, %v145_v34  ;;  %v270_v43 = vrot.slane %v269_v39, 2 }
  0xff   :  { %v278_v44 = vadd.f32 %v277_v40, %v276_v36 }
 0x100   :  { %v140_v45 = vadd.f32 %v139_v41, %v138_v37  ;;  %v148_v46 = vrot.slane %v147_v42, 2  ;;  %v271_v47 = vadd.f32 %v270_v43, %v269_v39 }
 0x101   :  { %v279_v48 = vrot.slane %v278_v44, 2 }
 0x102   :  { %v141_v49 = vrot.slane %v140_v45, 1  ;;  %v149_v50 = vadd.f32 %v148_v46, %v147_v42  ;;  %v272_v51 = vrot.slane %v271_v47, 1 }
 0x103   :  { %v280_v52 = vadd.f32 %v279_v48, %v278_v44 }
 0x104   :  { %v150_v53 = vrot.slane %v149_v50, 1  ;;  %v142_v55 = vadd.f32 %v141_v49, %v140_v45  ;;  %v273_v57 = vadd.f32 %v272_v51, %v271_v47 }
 0x105   :  { %v281_v54 = vrot.slane %v280_v52, 1 }
 0x106   :  { %v151_v56 = vadd.f32 %v150_v53, %v149_v50 }
 0x107   :  { %v282_v59 = vadd.f32 %v281_v54, %v280_v52 }
 0x108   :  { %v284_v58 = vsel %vm283_vm1, %v142_v55, %v151_v56 }
 0x109   :  { %v286_v60 = vsel %vm285_vm2, %v284_v58, %v273_v57 }
 0x10a   :  { %v288_v61 = vsel %vm287_vm3, %v286_v60, %v282_v59 }
 0x10b   :  { %v290_v62 = vsel %vm289_vm4, %v288_v61, 0.0 }
 0x10c   :  { %291 = vst [vmem:[%s512_s6] sm:$0xff] %v290_v62 }

// kernel: residual_block_2d.7
= control target key start
LH: loop header
LB: loop body
LE: loop exit
PB: predicated region body
PF: predicated region fallthrough
CT: control target
= control target key end

     0   :  { %v17_v0 = vlaneseq  ;;  %s94_s2 = inlined_call_operand.vmem [shape: f32[8,128], index: 2, kind: input, shape index: {}]   ;;  %s95_s0 = inlined_call_operand.vmem [shape: f32[16,128], index: 0, kind: input, shape index: {}]   ;;  %s96_s1 = inlined_call_operand.vmem [shape: f32[16,128], index: 1, kind: input, shape index: {}]   ;;  %s97_s3 = inlined_call_operand.vmem [shape: f32[16,128], index: 3, kind: output, shape index: {}]  }
   0x1   :  { %v14_v2 = vld [vmem:[%s94_s2] sm:$0xff]  ;;  %v16_v9 = vld [vmem:[%s95_s0 + $0x8] sm:$0xff] }
   0x2   :  { %v18_v1 = vshrl.u32 %v17_v0, 7  ;;  %v15_v3 = vld [vmem:[%s95_s0] sm:$0xff]  ;;  %v30_v10 = vld [vmem:[%s96_s1 + $0x8] sm:$0xff] }
   0x3   :  { %v29_v8 = vld [vmem:[%s96_s1] sm:$0xff] }
   0x4   :  { %v19_v4 = vsub.s32 0, %v18_v1  ;;  %v25_v5 = vsub.s32 1, %v18_v1  ;;  %v33_v6 = vsub.s32 2, %v18_v1  ;;  %v39_v7 = vsub.s32 3, %v18_v1 }
   0x6   :  { %v20_v11 = vrot.slane %v14_v2, %v19_v4  ;;  %v26_v12 = vrot.slane %v14_v2, %v25_v5  ;;  %v34_v13 = vrot.slane %v14_v2, %v33_v6  ;;  %v40_v14 = vrot.slane %v14_v2, %v39_v7 }
   0x8   :  { %v21_v15 = vmul.f32 %v20_v11, %v15_v3  ;;  %v35_v16 = vmul.f32 %v34_v13, %v29_v8  ;;  %v22_v17 = vmul.f32 %v20_v11, %v16_v9  ;;  %v36_v18 = vmul.f32 %v34_v13, %v30_v10 }
   0xa   :  { %v27_v19 = vadd.f32 %v26_v12, %v21_v15  ;;  %v41_v20 = vadd.f32 %v40_v14, %v35_v16  ;;  %v28_v21 = vadd.f32 %v26_v12, %v22_v17  ;;  %v42_v22 = vadd.f32 %v40_v14, %v36_v18 }
   0xc   :  { %v43_v23 = vadd.f32 %v41_v20, %v27_v19  ;;  %v44_v24 = vadd.f32 %v42_v22, %v28_v21 }
   0xe   :  { %v45_v25 = vmax.f32 %v43_v23, 0.0  ;;  %v46_v26 = vmax.f32 %v44_v24, 0.0 }
  0x10   :  { %47 = vst [vmem:[%s97_s3] sm:$0xff] %v45_v25  ;;  %48 = vst [vmem:[%s97_s3 + $0x8] sm:$0xff] %v46_v26 }

</bundles_post_ra>
